<compile_context>
chip_gen: v5e
topology: v5e:2x2
jax: 0.10.0
libtpu: 0.0.40
codegen_flags: <defaults>
</compile_context>

<pallas_src>
import functools

import jax
import jax.numpy as jnp
from jax.experimental import pallas as pl
from jax.experimental.pallas import tpu as pltpu

_LANE = 128
_SUB = 8
_NUM_SPLITS = 2                           # leading "parallel" grid axis (2 TCs on v7x)
_TARGET_BLOCK_ROWS = 8192                 # 8192 * 128 * 4B = 4 MiB per input per step
_SCALE = 1.0 / 320.0 / 2.0 / 240.0        # matches the hard-coded PyTorch scaling


def _logloss_kernel(o_ref, t_ref, acc_ref, *, acc_rows, has_partial, tail_valid_rows):
    """Accumulate sum(log1p(|t - o|)) of one (1, block_rows, 128) block into a
    lane-dense (1, acc_rows, 128) resident accumulator (one per split)."""
    i = pl.program_id(1)

    @pl.when(i == 0)
    def _init():
        acc_ref[...] = jnp.zeros_like(acc_ref)

    o = o_ref[0].astype(jnp.float32)
    t = t_ref[0].astype(jnp.float32)
    d = jnp.abs(t - o)

    def fold(x):
        # Lane-dense VPU adds only: fold (block_rows, 128) -> (acc_rows, 128).
        # acc_rows independent chains -> ILP; the single cross-lane/sublane
        # reduce happens once, outside the kernel.
        return jnp.log1p(x).reshape(-1, acc_rows, _LANE).sum(axis=0)[None]

    if has_partial:
        # Only the last block of each split is partial; gate the mask so every
        # other block runs the clean path (no iota/compare/select on hot path).
        is_tail = i == pl.num_programs(1) - 1

        @pl.when(is_tail)
        def _tail():
            row = jax.lax.broadcasted_iota(jnp.int32, d.shape, 0)
            acc_ref[...] += fold(jnp.where(row < tail_valid_rows, d, 0.0))

        @pl.when(jnp.logical_not(is_tail))
        def _full():
            acc_ref[...] += fold(d)
    else:
        acc_ref[...] += fold(d)


def log_loss(output: jax.Array, target: jax.Array,
             max_block_rows: int = _TARGET_BLOCK_ROWS) -> jax.Array:
    assert output.shape == target.shape
    o = output.reshape(-1)
    t = target.reshape(-1)
    n = o.shape[0]

    # Prefix handled by the kernel must be a multiple of (splits * 8 * 128) so
    # each split gets an equal, (8,128)-aligned slab.  The tiny remainder is
    # summed with plain jnp below (no jnp.pad, no extra HBM round trip).
    chunk = _NUM_SPLITS * _SUB * _LANE
    n_aligned = (n // chunk) * chunk

    total = jnp.float32(0.0)

    if n_aligned:
        rows_per_split = n_aligned // (_NUM_SPLITS * _LANE)      # multiple of 8
        o3 = o[:n_aligned].reshape(_NUM_SPLITS, rows_per_split, _LANE)
        t3 = t[:n_aligned].reshape(_NUM_SPLITS, rows_per_split, _LANE)

        block_rows = min(max_block_rows, rows_per_split)          # multiple of 8
        acc_rows = 64 if block_rows % 64 == 0 else _SUB
        blocks_per_split = pl.cdiv(rows_per_split, block_rows)
        has_partial = (rows_per_split % block_rows) != 0
        tail_valid_rows = rows_per_split - (blocks_per_split - 1) * block_rows

        kernel = functools.partial(
            _logloss_kernel,
            acc_rows=acc_rows,
            has_partial=has_partial,
            tail_valid_rows=tail_valid_rows,
        )

        # 2 inputs x 2 pipeline buffers of one block each, plus margin.
        block_bytes = block_rows * _LANE * o3.dtype.itemsize
        vmem_limit = max(16 << 20, 4 * block_bytes + (8 << 20))

        partials = pl.pallas_call(
            kernel,
            out_shape=jax.ShapeDtypeStruct((_NUM_SPLITS, acc_rows, _LANE), jnp.float32),
            grid_spec=pltpu.PrefetchScalarGridSpec(
                num_scalar_prefetch=0,
                grid=(_NUM_SPLITS, blocks_per_split),
                in_specs=[
                    pl.BlockSpec((1, block_rows, _LANE), lambda c, i: (c, i, 0)),
                    pl.BlockSpec((1, block_rows, _LANE), lambda c, i: (c, i, 0)),
                ],
                # Constant block index over i => resident per-split accumulator.
                out_specs=pl.BlockSpec((1, acc_rows, _LANE), lambda c, i: (c, 0, 0)),
            ),
            compiler_params=pltpu.CompilerParams(
                dimension_semantics=("parallel", "arbitrary"),
                vmem_limit_bytes=vmem_limit,
            ),
        )(o3, t3)
        total = total + jnp.sum(partials)

    if n_aligned < n:
        # < 2048-element tail: plain jnp, costs ~nothing.
        o_tail = o[n_aligned:].astype(jnp.float32)
        t_tail = t[n_aligned:].astype(jnp.float32)
        total = total + jnp.sum(jnp.log1p(jnp.abs(t_tail - o_tail)))

    return total * _SCALE


def _ref_loss(output, target):
    return jnp.sum(jnp.log(jnp.abs(target - output) + 1.0)) / 320.0 / 2.0 / 240.0


if __name__ == "__main__":
    key = jax.random.PRNGKey(0)
    k1, k2, k3, k4, k5, k6 = jax.random.split(key, 6)

    # 1) Small NCHW-like shape (single block per split, aligned numel).
    x_shape = (2, 4, 16, 16)
    output = jax.random.normal(k1, x_shape, dtype=jnp.float32)
    target = jax.random.normal(k2, x_shape, dtype=jnp.float32)
    loss = jax.block_until_ready(log_loss(output, target))
    ref = _ref_loss(output, target)
    assert jnp.allclose(loss, ref, rtol=1e-5, atol=1e-6), (loss, ref)

    # 2) fastmri-like spatial shape (wide accumulator path, aligned numel).
    y_shape = (2, 2, 320, 320)
    output2 = jax.random.normal(k3, y_shape, dtype=jnp.float32)
    target2 = jax.random.normal(k4, y_shape, dtype=jnp.float32)
    loss2 = jax.block_until_ready(log_loss(output2, target2))
    ref2 = _ref_loss(output2, target2)
    assert jnp.allclose(loss2, ref2, rtol=1e-5, atol=1e-6), (loss2, ref2)

    # 3) Unaligned numel + small block override: exercises multi-step
    #    accumulation, the pl.when-gated in-kernel tail mask, and the
    #    wrapper-side jnp tail sum.
    z_shape = (2, 4, 64, 50)   # numel = 25600 -> aligned 24576 + tail 1024
    output3 = jax.random.normal(k5, z_shape, dtype=jnp.float32)
    target3 = jax.random.normal(k6, z_shape, dtype=jnp.float32)
    loss3 = jax.block_until_ready(log_loss(output3, target3, max_block_rows=64))
    ref3 = _ref_loss(output3, target3)
    assert jnp.allclose(loss3, ref3, rtol=1e-5, atol=1e-6), (loss3, ref3)

    print("KERNEL_OK")
</pallas_src>

<mosaic_0001>
module attributes {stable_mosaic.version = 11 : i64} {
  func.func @_logloss_kernel(%arg0: i32, %arg1: i32, %arg2: memref<1x8x128xf32, #tpu.memory_space<vmem>>, %arg3: memref<1x8x128xf32, #tpu.memory_space<vmem>>, %arg4: memref<1x8x128xf32, #tpu.memory_space<vmem>>) attributes {dimension_semantics = [#tpu.dimension_semantics<parallel>, #tpu.dimension_semantics<arbitrary>], iteration_bounds = array<i64: 2, 1>, scalar_prefetch = 0 : i64, scratch_operands = 0 : i64, tpu.core_type = #tpu.core_type<tc>, window_params = [{transform_indices = @transform_0, window_bounds = array<i64: 1, 8, 128>}, {transform_indices = @transform_1, window_bounds = array<i64: 1, 8, 128>}, {transform_indices = @transform_2, window_bounds = array<i64: 1, 8, 128>}]} {
    %c0_i32 = arith.constant 0 : i32
    %0 = arith.cmpi eq, %arg1, %c0_i32 : i32
    %1 = arith.extui %0 : i1 to i32
    %c0_i32_0 = arith.constant 0 : i32
    %2 = arith.cmpi ne, %1, %c0_i32_0 : i32
    scf.if %2 {
      %cst_12 = arith.constant 0.000000e+00 : f32
      %16 = vector.broadcast %cst_12 : f32 to vector<1x8x128xf32>
      %c0_13 = arith.constant 0 : index
      %c0_14 = arith.constant 0 : index
      %c0_15 = arith.constant 0 : index
      %17 = vector.load %arg4[%c0_13, %c0_14, %c0_15] : memref<1x8x128xf32, #tpu.memory_space<vmem>>, vector<1x8x128xf32>
      tpu.vector_store %arg4[%c0_13, %c0_14, %c0_15], %16 {strides = array<i32>} : memref<1x8x128xf32, #tpu.memory_space<vmem>>, vector<1x8x128xf32>,
    } else {
    }
    %c0 = arith.constant 0 : index
    %c0_1 = arith.constant 0 : index
    %c0_2 = arith.constant 0 : index
    %3 = vector.load %arg2[%c0, %c0_1, %c0_2] : memref<1x8x128xf32, #tpu.memory_space<vmem>>, vector<1x8x128xf32>
    %4 = vector.shape_cast %3 : vector<1x8x128xf32> to vector<8x128xf32>
    %c0_3 = arith.constant 0 : index
    %c0_4 = arith.constant 0 : index
    %c0_5 = arith.constant 0 : index
    %5 = vector.load %arg3[%c0_3, %c0_4, %c0_5] : memref<1x8x128xf32, #tpu.memory_space<vmem>>, vector<1x8x128xf32>
    %6 = vector.shape_cast %5 : vector<1x8x128xf32> to vector<8x128xf32>
    %7 = arith.subf %6, %4 : vector<8x128xf32>
    %8 = math.absf %7 : vector<8x128xf32>
    %c0_6 = arith.constant 0 : index
    %c0_7 = arith.constant 0 : index
    %c0_8 = arith.constant 0 : index
    %9 = vector.load %arg4[%c0_6, %c0_7, %c0_8] : memref<1x8x128xf32, #tpu.memory_space<vmem>>, vector<1x8x128xf32>
    %10 = math.log1p %8 : vector<8x128xf32>
    %11 = vector.shape_cast %10 : vector<8x128xf32> to vector<1x8x128xf32>
    %cst = arith.constant dense<0.000000e+00> : vector<8x128xf32>
    %12 = vector.multi_reduction <add>, %11, %cst [0] : vector<1x8x128xf32> to vector<8x128xf32>
    %13 = vector.shape_cast %12 : vector<8x128xf32> to vector<1x8x128xf32>
    %14 = arith.addf %9, %13 : vector<1x8x128xf32>
    %c0_9 = arith.constant 0 : index
    %c0_10 = arith.constant 0 : index
    %c0_11 = arith.constant 0 : index
    %15 = vector.load %arg4[%c0_9, %c0_10, %c0_11] : memref<1x8x128xf32, #tpu.memory_space<vmem>>, vector<1x8x128xf32>
    tpu.vector_store %arg4[%c0_9, %c0_10, %c0_11], %14 {strides = array<i32>} : memref<1x8x128xf32, #tpu.memory_space<vmem>>, vector<1x8x128xf32>,
    return
  }
  func.func @transform_0(%arg0: i32, %arg1: i32) -> (i32, i32, i32) {
    %c0_i32 = arith.constant 0 : i32
    %c0_i32_0 = arith.constant 0 : i32
    return %arg0, %arg1, %c0_i32 : i32, i32, i32
  }
  func.func @transform_1(%arg0: i32, %arg1: i32) -> (i32, i32, i32) {
    %c0_i32 = arith.constant 0 : i32
    %c0_i32_0 = arith.constant 0 : i32
    return %arg0, %arg1, %c0_i32 : i32, i32, i32
  }
  func.func @transform_2(%arg0: i32, %arg1: i32) -> (i32, i32, i32) {
    %c0_i32 = arith.constant 0 : i32
    %c0_i32_0 = arith.constant 0 : i32
    %c0_i32_1 = arith.constant 0 : i32
    return %arg0, %c0_i32, %c0_i32_0 : i32, i32, i32
  }
}

</mosaic_0001>

<bundles_post_ra>
// kernel: tpu_custom_call.1
= control target key start
LH: loop header
LB: loop body
LE: loop exit
PB: predicated region body
PF: predicated region fallthrough
CT: control target
= control target key end

     0   :  { %7 = vsyncpa [#allocation3], 0  ;;  %s741_s0 = inlined_call_operand.hbm [shape: f32[2,8,128], index: 0, kind: input, shape index: {}]   ;;  %s742_s1 = inlined_call_operand.hbm [shape: f32[2,8,128], index: 1, kind: input, shape index: {}]   ;;  %s743_s2 = inlined_call_operand.hbm [shape: f32[2,8,128], index: 2, kind: output, shape index: {}]  }
   0x1   :  { %9 = vsyncpa [#allocation3 + $0x1], 0 }
   0x2   :  { %10 = vsyncpa [#allocation6], 0 }
   0x3   :  { %12 = vsyncpa [#allocation6 + $0x1], 0 }
   0x4   :  { %13 = vsyncpa [#allocation4], 0 }
   0x5   :  { %15 = vsyncpa [#allocation4 + $0x1], 0  ;;  %s608_s9 = smov 0   ;;  %s610_s10 = smov 0  }
   0x6   :  { %s612_s11 = smov 0   ;;  %s614_s12 = smov 0  }
   0x7   :  { %s616_s13 = smov 0   ;;  %s618_s14 = smov 0  }
   0x8 LB: > { %s359_s15 = sadd.s32 4294967295, %s591_s14   ;;  %s360_s16 = sadd.s32 4294967294, %s591_s14   ;;  %s591_s14 = sphi %s618_s14, %s21_s14   ;;  %s587_s13 = sphi %s616_s13, %s752_s13   ;;  %s583_s12 = sphi %s614_s12, %s751_s12   ;;  %s579_s11 = sphi %s612_s11, %s750_s11   ;;  %s575_s10 = sphi %s610_s10, %s749_s10   ;;  %s571_s9 = sphi %s608_s9, %s748_s9  }
   0x9   : > { %s33_s17 = sadd.s32 1, %s587_s13  ;;  %s42_s18 = sadd.s32 1, %s579_s11 }
   0xa   : > { %p35_p0 = scmp.ge.s32.totalorder %s33_s17, 2  ;;  %p49_p1 = scmp.ne.s32.totalorder %s579_s11, %s575_s10 }
   0xb   : > { %p50_p2 = scmp.eq.s32.totalorder %s591_s14, 0  ;;  %p55_p3 = scmp.ne.s32.totalorder %s575_s10, %s571_s9 }
   0xc   : > { %s754_s17 = smov (%p35_p0, %s33_s17), 0  ;;  %p56_p5 = scmp.eq.s32.totalorder %s359_s15, 0 }
   0xd   : > { %p649_p4 = por %p50_p2, %p49_p1  ;;  %s37_s20 = ssub.s32 %s587_s13, %s754_s17 }
   0xe   : > { %p107_p6 = scmp.eq.s32.totalorder %s359_s15, 1  ;;  %p40_p7 = scmp.eq.s32.totalorder %s37_s20, 0 }
   0xf   : > { %p655_p8 = por %p56_p5, %p55_p3  ;;  %p113_p10 = scmp.eq.s32.totalorder %s360_s16, 1 }
  0x10   : > { %p659_p9 = por %p107_p6, %p49_p1  ;;  %p362_p12 = scmp.ge.s32.totalorder %s591_s14, 2 }
  0x11   : > { %s664_s23 = scalar_select %p40_p7, %s579_s11, %s42_s18  }
  0x12   : > { %p666_p11 = por %p113_p10, %p55_p3  ;;  %p392_p13 = scmp.lt.s32.totalorder %s591_s14, 2 }
  0x13   : > { %s133_s25 = sand.u32 1, %s579_s11   ;;  %s364_s27 = sshll.u32 %s587_s13, 3 }
  0x14   : > { %s363_s26 = sshll.u32 %s133_s25, 3  ;;  %s142_s30 = scalar_lea.hbm %s741_s0, %s364_s27 }
  0x15   : > { %s137_s3 = scalar_lea.vmem [#allocation2], %s363_s26  ;;  %s144_s5 = sshll.u32 %s142_s30, 4  ;;  %s145_s5 = int_to_ptr.hbm [resolvable:$true] %s144_s5 }
  0x16   : > { %s146_s4 = sshll.u32 %s137_s3, 4  ;;  %p382_p0 = pnand %p392_p13, %p649_p4  ;;  %s147_s4 = int_to_ptr.vmem [resolvable:$true] %s146_s4 }
  0x17   : > { %p367_p1 = scmp.ge.s32.totalorder %s591_s14, 1  ;;  %p171_p2 = scmp.lt.s32.totalorder %s591_s14, 3 }
  0x18   : > { %s134_s6 = scalar_lea.sflag [#allocation3], %s133_s25  ;;  %s162_s15 = scalar_lea.hbm %s742_s1, %s364_s27 }
  0x19   : > { %384 = dma.hbm_to_vmem [thread:$0]  (!%p382_p0), %s145_s5, 128, %s147_s4, %s134_s6  }
  0x1a   : > { %p172_p3 = pnand %p367_p1, %p171_p2  ;;  %s157_s16 = scalar_lea.vmem [#allocation5], %s363_s26 }
  0x1b   : > { %s166_s18 = sshll.u32 %s157_s16, 4  ;;  %s164_s20 = sshll.u32 %s162_s15, 4  ;;  %s167_s18 = int_to_ptr.vmem [resolvable:$true] %s166_s18  ;;  %s165_s20 = int_to_ptr.hbm [resolvable:$true] %s164_s20 }
  0x1c   : > { %s154_s28 = scalar_lea.sflag [#allocation6], %s133_s25  ;;  %175 = sbr.rel (%p172_p3) target bundleno = 56 (0x38), region = 28 }
  0x1d   : > { %387 = dma.hbm_to_vmem [thread:$0]  (!%p382_p0), %s165_s20, 128, %s167_s18, %s154_s28  }
  0x1e   : > { %s685_s19 = sand.u32 (!%p172_p3), 1, %s575_s10  }
  0x1f   : > { %s688_s29 = sshll.u32 (!%p172_p3), %s685_s19, 3  ;;  %s178_s30 = scalar_lea.sflag (!%p172_p3), [#allocation3], %s685_s19 }
  0x20   : > { %s181_s3 = scalar_lea.vmem (!%p172_p3), [#allocation2], %s688_s29 }
  0x21   : > { %558 = dma.done.wait (%p655_p8), %s178_s30, 128  }
  0x22   : > { %560 = vsyncadd (%p655_p8), %s178_s30, 4294967168  ;;  %s188_s25 = scalar_lea.sflag [#allocation6], %s685_s19  ;;  %s191_s26 = scalar_lea.vmem [#allocation5], %s688_s29 }
  0x23   : > { %562 = dma.done.wait (%p655_p8), %s188_s25, 128  }
  0x24   : > { %564 = vsyncadd (%p655_p8), %s188_s25, 4294967168  ;;  %v223_v0 = vld [vmem:[%s181_s3] sm:$0xff]  ;;  %v224_v1 = vld [vmem:[%s191_s26] sm:$0xff]  ;;  %s372_s27 = sshll.u32 %s583_s12, 3  ;;  %s217_s21 = scalar_lea.vmem [#allocation7], %s688_s29 }
  0x25   : > { %v225_v2 = vsub.f32 %v224_v1, %v223_v0  ;;  %s251_s6 = scalar_lea.hbm %s743_s2, %s372_s27  ;;  %s253_s7 = sshll.u32 %s217_s21, 4  ;;  %s254_s7 = int_to_ptr.vmem [resolvable:$true] %s253_s7 }
  0x26   : > { %s255_s8 = sshll.u32 %s251_s6, 4  ;;  %s241_s15 = scalar_lea.sflag [#allocation4], %s685_s19  ;;  %s256_s8 = int_to_ptr.hbm [resolvable:$true] %s255_s8 }
  0x27   : > { %v226_v3 = vand.u32 2147483647, %v225_v2  ;;  %s519_s16 = sshra.s32 %s256_s8, 4  ;;  %s525_s28 = scalar_lea.hbm %s743_s2, 16  ;;  %s520_s16 = int_to_ptr.hbm [resolvable:$true] %s519_s16 }
  0x28   : > { %s521_s12 = scalar_lea.hbm %s520_s16, 8  ;;  %p526_p7 = scmp.lt.s32.totalorder %s520_s16, %s743_s2 }
  0x29   : > { %v228_v4 = vadd.f32 1.0, %v226_v3  ;;  %v231_v5 = vmul.f32 -0.5, %v226_v3  ;;  %vm235_vm0 = vcmp.lt.f32.partialorder %v226_v3, 0.0004427343  ;;  %p522_p4 = scmp.ne.s32.totalorder %s520_s16, %s521_s12  ;;  %p527_p8 = scmp.lt.s32.totalorder %s525_s28, %s521_s12 }
  0x2b   : > { %443 = vlog2.f32 %v228_v4  ;;  %v232_v6 = vadd.f32 1.0, %v231_v5  ;;  %p523_p5 = pnand %p522_p4, %p659_p9  ;;  %p528_p10 = por %p527_p8, %p526_p7 }
  0x2d   : > { %v233_v7 = vmul.f32 %v232_v6, %v226_v3  ;;  %p524_p6 = pneg %p523_p5 }
  0x2f   : > { %p529_p13 = pnand %p528_p10, %p524_p6 }
  0x31   : > { %v444_v8 = vpop.eup %443 }
  0x32   : > { %v230_v9 = vmul.f32 0.6931472, %v444_v8 }
  0x34   : > { %v236_v10 = vsel %vm235_vm0, %v233_v7, %v230_v9 }
  0x35   : > { %239 = vst [vmem:[%s217_s21] sm:$0xff] %v236_v10 }
  0x36   : > { %532 = shalt.err (!%p529_p13)
}
  0x37   : > { %379 = dma.vmem_to_hbm [thread:$0]  (%p659_p9), %s254_s7, 128, %s256_s8, %s241_s15  }
  0x38 PF: > { %s267_s19 = sand.u32 1, %s571_s9   ;;  %p389_p0 = pnand %p362_p12, %p666_p11 }
  0x39   : > { %s268_s3 = scalar_lea.sflag [#allocation4], %s267_s19 }
  0x3a   : > { %p390_p1 = pneg %p389_p0 }
  0x3c   : > { %566 = dma.done.wait (%p390_p1), %s268_s3, 128  }
  0x3d   : > { %568 = vsyncadd (%p390_p1), %s268_s3, 4294967168  ;;  %s21_s14 = sadd.s32 1, %s591_s14   ;;  %s748_s9 = smov %s575_s10 }
  0x3e   : > { %p18_p2 = scmp.ge.s32.totalorder %s21_s14, 4   ;;  %s749_s10 = smov %s579_s11 }
  0x3f   : > { %s750_s11 = smov %s664_s23  ;;  %s751_s12 = smov %s587_s13 }
  0x40   : > { %s752_s13 = smov %s754_s17  ;;  %20 = sbr.rel (!%p18_p2) target bundleno = 8 (0x8), region = 90 }
  0x45   :  { %274 = vsyncpa [#allocation3], 1 }
  0x46   :  { %276 = vsyncpa [#allocation3 + $0x1], 1 }
  0x47   :  { %277 = vsyncpa [#allocation6], 1 }
  0x48   :  { %279 = vsyncpa [#allocation6 + $0x1], 1 }
  0x49   :  { %280 = vsyncpa [#allocation4], 1 }
  0x4a   :  { %282 = vsyncpa [#allocation4 + $0x1], 1 }

</bundles_post_ra>
